<compile_context>
chip_gen: v6e
topology: v6e:2x2x1
jax: 0.10.0
libtpu: 0.0.40
codegen_flags: <defaults>
</compile_context>

<pallas_src>
import math

import jax
import jax.numpy as jnp
from jax.experimental import pallas as pl
from jax.experimental.pallas import tpu as pltpu


# ----------------------------------------------------------------------------
# Kernel
# ----------------------------------------------------------------------------
def refine_branch_kernel(x_ref, w_ref, shift_ref, mk_ref, mv_ref, ones_ref,
                         conv_ref, attn_ref, vec_ref):
    """One (batch-tile, branch) grid point.

    x_ref:    (tb, N, Cin)       bf16 input tokens (shared across branches)
    w_ref:    (Cin, Cp)          bf16 folded conv*BN weight for this branch
    shift_ref:(1, Cp)            f32 folded bias/BN shift
    mk_ref:   (Cp, HSp)          bf16 block-diagonal external-attn key memory
    mv_ref:   (HSp, Cp)          bf16 block-diagonal external-attn value memory
    ones_ref: (HSp, HSp)         bf16 block-diagonal SxS ones (per-head L1 sums)
    conv_ref: (tb, N, Cp)        bf16 conv+bn+relu feature out
    attn_ref: (tb, N, Cp)        bf16 attention feature out
    vec_ref:  (tb, Cp)           f32 global-avg-pooled vector out
    """
    tb, N, Cin = x_ref.shape
    Cp = w_ref.shape[-1]
    HSp = mk_ref.shape[-1]

    # --- 1x1 conv + folded BN/bias + ReLU (one MXU matmul, M = tb*N) ---
    x2d = x_ref[...].reshape(tb * N, Cin)                        # bf16
    y = jnp.dot(x2d, w_ref[...], preferred_element_type=jnp.float32)
    y = jnp.maximum(y + shift_ref[...], 0.0)                     # f32 (tb*N, Cp)
    y3 = y.reshape(tb, N, Cp)
    conv_ref[...] = y3.astype(conv_ref.dtype)

    # --- multi-head external attention, heads packed block-diagonally ---
    logits = jnp.dot(y.astype(mk_ref.dtype), mk_ref[...],
                     preferred_element_type=jnp.float32)          # (tb*N, HSp)
    logits3 = logits.reshape(tb, N, HSp)
    # softmax over tokens, per batch (block-diag keeps heads independent)
    m = jnp.max(logits3, axis=1, keepdims=True)
    e = jnp.exp(logits3 - m)
    attn3 = e * pl.reciprocal(jnp.sum(e, axis=1, keepdims=True), approx=True)
    attn2d = attn3.reshape(tb * N, HSp)                           # f32
    # per-head L1 normalization over memory: bf16 block-diag ones matmul gives
    # the per-head sums already broadcast back onto all HSp lanes.
    denom = jnp.dot(attn2d.astype(ones_ref.dtype), ones_ref[...],
                    preferred_element_type=jnp.float32)           # (tb*N, HSp)
    attn_n = (attn2d * pl.reciprocal(denom + 1e-9, approx=True)).astype(
        mv_ref.dtype)
    out = jnp.dot(attn_n, mv_ref[...],
                  preferred_element_type=jnp.float32)             # (tb*N, Cp)
    attn_ref[...] = out.reshape(tb, N, Cp).astype(attn_ref.dtype)

    # --- AdaptiveAvgPool2d((1,1)) == mean over tokens of the conv feature ---
    vec_ref[...] = (jnp.sum(y3, axis=1) * (1.0 / N)).astype(vec_ref.dtype)


# ----------------------------------------------------------------------------
# Parameter preparation (run once, outside the per-call path)
# ----------------------------------------------------------------------------
def _round_up(x, m):
    return ((x + m - 1) // m) * m


def prepare_refine_params(params, *, num_heads=4,
                          compute_dtype=jnp.bfloat16, lane_multiple=128):
    """Fold conv bias + inference BN into the weights, pack heads
    block-diagonally, and pad the lane dims (Cout, H*S) to `lane_multiple` so
    all kernel stores are lane-dense. Returns a dict consumed by
    refine_forward; call once and reuse."""
    conv_w = params["conv_w"]        # (K, Cin, Cout) f32
    conv_b = params["conv_b"]        # (K, 1, Cout)
    bn_scale = params["bn_scale"]    # (K, 1, Cout)
    bn_shift = params["bn_shift"]    # (K, 1, Cout)
    mk = params["mk"]                # (K, H, Ch, S)
    mv = params["mv"]                # (K, H, S, Ch)

    K, Cin, Cout = conv_w.shape
    Hh, Ch, S = mk.shape[1], mk.shape[2], mk.shape[3]
    assert Hh == num_heads and Hh * Ch == Cout
    HS = Hh * S
    Cp = _round_up(Cout, lane_multiple)
    HSp = _round_up(HS, lane_multiple)

    # Fold conv bias + inference BN:
    #   y = (x@w + b)*scale + shift = x @ (w*scale) + (b*scale + shift)
    w_folded = (conv_w * bn_scale).astype(compute_dtype)                # (K,Cin,Cout)
    shift_folded = (conv_b * bn_scale + bn_shift).astype(jnp.float32)   # (K,1,Cout)

    # Block-diagonal head packing (zero-FLOP padding is free at these widths).
    eye_h = jnp.eye(Hh, dtype=jnp.float32)
    mk_bd = jnp.einsum("khcs,hg->khcgs", mk, eye_h).reshape(K, Cout, HS)
    mv_bd = jnp.einsum("khsc,hg->khsgc", mv, eye_h).reshape(K, HS, Cout)

    # Zero-pad lane dims to multiples of `lane_multiple`: padded channels /
    # memory slots contribute exactly zero to every real output.
    w_p = jnp.zeros((K, Cin, Cp), compute_dtype).at[:, :, :Cout].set(w_folded)
    shift_p = jnp.zeros((K, 1, Cp), jnp.float32).at[:, :, :Cout].set(shift_folded)
    mk_p = jnp.zeros((K, Cp, HSp), compute_dtype).at[:, :Cout, :HS].set(
        mk_bd.astype(compute_dtype))
    mv_p = jnp.zeros((K, HSp, Cp), compute_dtype).at[:, :HS, :Cout].set(
        mv_bd.astype(compute_dtype))

    # Block-diagonal SxS ones -> per-head L1 sums broadcast onto all lanes.
    # bf16 so the denominator matmul takes the fast single-pass MXU path.
    # Identity in the padded tail keeps the padded denominators bounded.
    ones_bd = jnp.kron(eye_h, jnp.ones((S, S), jnp.float32))
    ones_p = jnp.zeros((HSp, HSp), jnp.float32).at[:HS, :HS].set(ones_bd)
    if HSp > HS:
        ones_p = ones_p.at[HS:, HS:].set(jnp.eye(HSp - HS, dtype=jnp.float32))
    ones_p = ones_p.astype(compute_dtype)

    return dict(w=w_p, shift=shift_p, mk=mk_p, mv=mv_p, ones=ones_p,
                cout=Cout, hs=HS, num_heads=Hh)


def _default_vmem_limit_bytes():
    """Per-generation VMEM budget: physical capacity minus ~24 MiB headroom
    (internal scratch + double buffers). ~40 MiB on v7x, ~104 MiB on v5e/v6e."""
    cap = None
    try:
        cap = pltpu.get_tpu_info().vmem_capacity_bytes
    except Exception:
        cap = None
    if not cap or cap <= 0:
        cap = 64 * 1024 * 1024
    return max(32 * 1024 * 1024, cap - 24 * 1024 * 1024)


# ----------------------------------------------------------------------------
# Forward wrapper
# ----------------------------------------------------------------------------
def refine_forward(x_nchw, prep, *, compute_dtype=jnp.bfloat16,
                   feat_dtype=jnp.bfloat16, batch_tile=None,
                   vmem_limit_bytes=None):
    """Fused Refine forward. Returns (feat_group, attn_group, vec_group) as
    lists of arrays matching the PyTorch module's shapes (NCHW / (B, C)).
    Feature maps are returned in `feat_dtype` (bf16 by default); the pooled
    vectors are f32."""
    B, Cin, H, W = x_nchw.shape
    N = H * W
    assert N % 8 == 0, "H*W must be a multiple of 8 (see TODO on token padding)"
    x_tok = jnp.transpose(x_nchw, (0, 2, 3, 1)).reshape(B, N, Cin)
    x_tok = x_tok.astype(compute_dtype)

    w, shift = prep["w"], prep["shift"]
    mk, mv, ones = prep["mk"], prep["mv"], prep["ones"]
    K, _, Cp = w.shape
    HSp = mk.shape[-1]
    Cout = prep["cout"]

    # Batch tile: bound per-block token rows so all f32 intermediates plus
    # double-buffered outputs fit comfortably (matters on v7x's 64 MiB VMEM);
    # also gives the megacore more parallel work items than K alone.
    if batch_tile is None:
        if B % 8 == 0 and B * N > 4096:
            tb = 8
            while tb * 2 <= B and B % (tb * 2) == 0 and tb * N < 2048:
                tb *= 2
        else:
            tb = B  # small batch: keep full-extent block (sublane-safe)
    else:
        tb = batch_tile
    assert B % tb == 0

    if vmem_limit_bytes is None:
        vmem_limit_bytes = _default_vmem_limit_bytes()

    conv_out, attn_out, vec_out = pl.pallas_call(
        refine_branch_kernel,
        out_shape=(
            jax.ShapeDtypeStruct((K, B, N, Cp), feat_dtype),
            jax.ShapeDtypeStruct((K, B, N, Cp), feat_dtype),
            jax.ShapeDtypeStruct((K, B, Cp), jnp.float32),
        ),
        grid_spec=pltpu.PrefetchScalarGridSpec(
            num_scalar_prefetch=0,
            # k innermost: x's block index is constant across the inner axis,
            # so each batch tile is fetched from HBM once for all K branches.
            grid=(B // tb, K),
            in_specs=[
                pl.BlockSpec((tb, N, Cin), lambda b, k: (b, 0, 0)),
                pl.BlockSpec((pl.Squeezed(), Cin, Cp), lambda b, k: (k, 0, 0)),
                pl.BlockSpec((pl.Squeezed(), 1, Cp), lambda b, k: (k, 0, 0)),
                pl.BlockSpec((pl.Squeezed(), Cp, HSp), lambda b, k: (k, 0, 0)),
                pl.BlockSpec((pl.Squeezed(), HSp, Cp), lambda b, k: (k, 0, 0)),
                pl.BlockSpec((HSp, HSp), lambda b, k: (0, 0)),
            ],
            out_specs=[
                pl.BlockSpec((pl.Squeezed(), tb, N, Cp),
                             lambda b, k: (k, b, 0, 0)),
                pl.BlockSpec((pl.Squeezed(), tb, N, Cp),
                             lambda b, k: (k, b, 0, 0)),
                pl.BlockSpec((pl.Squeezed(), tb, Cp), lambda b, k: (k, b, 0)),
            ],
        ),
        compiler_params=pltpu.CompilerParams(
            dimension_semantics=("parallel", "parallel"),
            vmem_limit_bytes=int(vmem_limit_bytes),
        ),
    )(x_tok, w, shift, mk, mv, ones)

    # Back to PyTorch conventions in ONE stacked slice+reshape+transpose per
    # tensor (instead of 2K per-branch transposes); lane padding sliced off.
    conv5 = conv_out[:, :, :, :Cout].reshape(K, B, H, W, Cout)
    attn5 = attn_out[:, :, :, :Cout].reshape(K, B, H, W, Cout)
    conv_nchw = jnp.transpose(conv5, (0, 1, 4, 2, 3))
    attn_nchw = jnp.transpose(attn5, (0, 1, 4, 2, 3))
    vec = vec_out[:, :, :Cout]

    feat_group = [conv_nchw[i] for i in range(K)]
    attn_group = [attn_nchw[i] for i in range(K)]
    vec_group = [vec[i] for i in range(K)]
    return feat_group, attn_group, vec_group


# ----------------------------------------------------------------------------
# Synthetic parameter init mirroring Refine.__init__
# ----------------------------------------------------------------------------
def init_refine_params(key, *, feat_size, comp_size, top_k, num_heads=4,
                       mem_size=16):
    """Deterministic synthetic parameter init mirroring Refine.__init__ shapes."""
    K = top_k + 1
    Ch = comp_size // num_heads
    k_w, k_b, k_mk, k_mv = jax.random.split(key, 4)

    # Conv2d(feat_size, comp_size, 1): kaiming_normal_(mode='fan_out', relu)
    fan_out = comp_size  # * 1 * 1
    conv_w = jax.random.normal(k_w, (K, feat_size, comp_size), jnp.float32) \
        * math.sqrt(2.0 / fan_out)
    # PyTorch default conv bias: U(-1/sqrt(fan_in), 1/sqrt(fan_in))
    bound = 1.0 / math.sqrt(feat_size)
    conv_b = jax.random.uniform(k_b, (K, 1, comp_size), jnp.float32, -bound, bound)

    # BatchNorm2d: gamma=1, beta=0, running_mean=0, running_var=1, eps=1e-5
    eps = 1e-5
    gamma = jnp.ones((K, 1, comp_size), jnp.float32)
    beta = jnp.zeros((K, 1, comp_size), jnp.float32)
    r_mean = jnp.zeros((K, 1, comp_size), jnp.float32)
    r_var = jnp.ones((K, 1, comp_size), jnp.float32)
    bn_scale = gamma / jnp.sqrt(r_var + eps)
    bn_shift = beta - r_mean * bn_scale

    # External attention memories (CHExtAttn stand-in), num_heads heads.
    mk = jax.random.normal(k_mk, (K, num_heads, Ch, mem_size), jnp.float32) \
        * (1.0 / math.sqrt(Ch))
    mv = jax.random.normal(k_mv, (K, num_heads, mem_size, Ch), jnp.float32) \
        * (1.0 / math.sqrt(mem_size))

    return dict(conv_w=conv_w, conv_b=conv_b, bn_scale=bn_scale,
                bn_shift=bn_shift, mk=mk, mv=mv)


if __name__ == "__main__":
    # Small, module-consistent shapes.
    B, feat_size, H, W = 2, 8, 8, 8
    comp_size, top_k, num_heads = 32, 2, 4

    key = jax.random.PRNGKey(0)
    k_x, k_p = jax.random.split(key)
    x = jax.random.normal(k_x, (B, feat_size, H, W), jnp.float32)  # NCHW

    params = init_refine_params(k_p, feat_size=feat_size, comp_size=comp_size,
                                top_k=top_k, num_heads=num_heads, mem_size=16)
    # Weight folding / block-diag packing / lane padding done ONCE, off the
    # per-call path.
    prep = prepare_refine_params(params, num_heads=num_heads)

    feat_group, attn_group, vec_group = refine_forward(x, prep)
    for t in feat_group + attn_group + vec_group:
        jax.block_until_ready(t)

    assert len(feat_group) == top_k + 1
    assert feat_group[0].shape == (B, comp_size, H, W)
    assert attn_group[0].shape == (B, comp_size, H, W)
    assert vec_group[0].shape == (B, comp_size)
    for t in feat_group + attn_group + vec_group:
        assert bool(jnp.all(jnp.isfinite(t.astype(jnp.float32))))
    print("KERNEL_OK")
</pallas_src>

<mosaic_0001>
module attributes {stable_mosaic.version = 11 : i64} {
  func.func @refine_branch_kernel(%arg0: i32, %arg1: i32, %arg2: memref<2x64x8xbf16, #tpu.memory_space<vmem>>, %arg3: memref<1x8x128xbf16, #tpu.memory_space<vmem>>, %arg4: memref<1x1x128xf32, #tpu.memory_space<vmem>>, %arg5: memref<1x128x128xbf16, #tpu.memory_space<vmem>>, %arg6: memref<1x128x128xbf16, #tpu.memory_space<vmem>>, %arg7: memref<128x128xbf16, #tpu.memory_space<vmem>>, %arg8: memref<1x2x64x128xbf16, #tpu.memory_space<vmem>>, %arg9: memref<1x2x64x128xbf16, #tpu.memory_space<vmem>>, %arg10: memref<1x2x128xf32, #tpu.memory_space<vmem>>) attributes {dimension_semantics = [#tpu.dimension_semantics<parallel>, #tpu.dimension_semantics<parallel>], iteration_bounds = array<i64: 1, 3>, scalar_prefetch = 0 : i64, scratch_operands = 0 : i64, tpu.core_type = #tpu.core_type<tc>, window_params = [{transform_indices = @transform_0, window_bounds = array<i64: 2, 64, 8>}, {transform_indices = @transform_1, window_bounds = array<i64: 1, 8, 128>}, {transform_indices = @transform_2, window_bounds = array<i64: 1, 1, 128>}, {transform_indices = @transform_3, window_bounds = array<i64: 1, 128, 128>}, {transform_indices = @transform_4, window_bounds = array<i64: 1, 128, 128>}, {pipeline_mode = #tpu.pipeline_mode<synchronous>, transform_indices = @transform_5, window_bounds = array<i64: 128, 128>}, {transform_indices = @transform_6, window_bounds = array<i64: 1, 2, 64, 128>}, {transform_indices = @transform_7, window_bounds = array<i64: 1, 2, 64, 128>}, {transform_indices = @transform_8, window_bounds = array<i64: 1, 2, 128>}]} {
    %c0 = arith.constant 0 : index
    %c0_0 = arith.constant 0 : index
    %c0_1 = arith.constant 0 : index
    %0 = vector.load %arg2[%c0, %c0_0, %c0_1] : memref<2x64x8xbf16, #tpu.memory_space<vmem>>, vector<2x64x8xbf16>
    %1 = vector.shape_cast %0 : vector<2x64x8xbf16> to vector<128x8xbf16>
    %c0_2 = arith.constant 0 : index
    %c0_3 = arith.constant 0 : index
    %c0_4 = arith.constant 0 : index
    %2 = vector.load %arg3[%c0_2, %c0_3, %c0_4] : memref<1x8x128xbf16, #tpu.memory_space<vmem>>, vector<1x8x128xbf16>
    %3 = vector.shape_cast %2 : vector<1x8x128xbf16> to vector<8x128xbf16>
    %cst = arith.constant dense<0.000000e+00> : vector<128x128xf32>
    %4 = tpu.matmul %1, %3, %cst {dimension_numbers = #tpu.dot_dimension_numbers<[1], [0], [0], [1], [0, 0, 1, 1], [], []>} : vector<128x8xbf16>, vector<8x128xbf16>, vector<128x128xf32> -> vector<128x128xf32>
    %c0_5 = arith.constant 0 : index
    %c0_6 = arith.constant 0 : index
    %c0_7 = arith.constant 0 : index
    %5 = vector.load %arg4[%c0_5, %c0_6, %c0_7] : memref<1x1x128xf32, #tpu.memory_space<vmem>>, vector<1x1x128xf32>
    %6 = vector.shape_cast %5 : vector<1x1x128xf32> to vector<1x128xf32>
    %7 = vector.broadcast %6 : vector<1x128xf32> to vector<128x128xf32>
    %8 = arith.addf %4, %7 : vector<128x128xf32>
    %cst_8 = arith.constant 0.000000e+00 : f32
    %9 = vector.broadcast %cst_8 : f32 to vector<128x128xf32>
    %10 = arith.maximumf %8, %9 : vector<128x128xf32>
    %11 = vector.shape_cast %10 : vector<128x128xf32> to vector<2x64x128xf32>
    %12 = arith.truncf %11 : vector<2x64x128xf32> to vector<2x64x128xbf16>
    %c0_9 = arith.constant 0 : index
    %c0_10 = arith.constant 0 : index
    %c0_11 = arith.constant 0 : index
    %c0_12 = arith.constant 0 : index
    %13 = vector.load %arg8[%c0_9, %c0_10, %c0_11, %c0_12] : memref<1x2x64x128xbf16, #tpu.memory_space<vmem>>, vector<1x2x64x128xbf16>
    %14 = vector.shape_cast %13 : vector<1x2x64x128xbf16> to vector<2x64x128xbf16>
    %15 = vector.shape_cast %12 : vector<2x64x128xbf16> to vector<1x2x64x128xbf16>
    tpu.vector_store %arg8[%c0_9, %c0_10, %c0_11, %c0_12], %15 {strides = array<i32>} : memref<1x2x64x128xbf16, #tpu.memory_space<vmem>>, vector<1x2x64x128xbf16>,
    %16 = arith.truncf %10 : vector<128x128xf32> to vector<128x128xbf16>
    %c0_13 = arith.constant 0 : index
    %c0_14 = arith.constant 0 : index
    %c0_15 = arith.constant 0 : index
    %17 = vector.load %arg5[%c0_13, %c0_14, %c0_15] : memref<1x128x128xbf16, #tpu.memory_space<vmem>>, vector<1x128x128xbf16>
    %18 = vector.shape_cast %17 : vector<1x128x128xbf16> to vector<128x128xbf16>
    %cst_16 = arith.constant dense<0.000000e+00> : vector<128x128xf32>
    %19 = tpu.matmul %16, %18, %cst_16 {dimension_numbers = #tpu.dot_dimension_numbers<[1], [0], [0], [1], [0, 0, 1, 1], [], []>} : vector<128x128xbf16>, vector<128x128xbf16>, vector<128x128xf32> -> vector<128x128xf32>
    %20 = vector.shape_cast %19 : vector<128x128xf32> to vector<2x64x128xf32>
    %cst_17 = arith.constant dense<0xFF800000> : vector<2x128xf32>
    %21 = vector.multi_reduction <maximumf>, %20, %cst_17 [1] : vector<2x64x128xf32> to vector<2x128xf32>
    %22 = vector.shape_cast %21 : vector<2x128xf32> to vector<2x1x128xf32>
    %23 = vector.broadcast %22 : vector<2x1x128xf32> to vector<2x64x128xf32>
    %24 = arith.subf %20, %23 : vector<2x64x128xf32>
    %25 = math.exp %24 : vector<2x64x128xf32>
    %cst_18 = arith.constant dense<0.000000e+00> : vector<2x128xf32>
    %26 = vector.multi_reduction <add>, %25, %cst_18 [1] : vector<2x64x128xf32> to vector<2x128xf32>
    %27 = vector.shape_cast %26 : vector<2x128xf32> to vector<2x1x128xf32>
    %28 = tpu.reciprocal %27 {approx = true} : vector<2x1x128xf32> -> vector<2x1x128xf32>
    %29 = vector.broadcast %28 : vector<2x1x128xf32> to vector<2x64x128xf32>
    %30 = arith.mulf %25, %29 : vector<2x64x128xf32>
    %31 = vector.shape_cast %30 : vector<2x64x128xf32> to vector<128x128xf32>
    %32 = arith.truncf %31 : vector<128x128xf32> to vector<128x128xbf16>
    %c0_19 = arith.constant 0 : index
    %c0_20 = arith.constant 0 : index
    %33 = vector.load %arg7[%c0_19, %c0_20] : memref<128x128xbf16, #tpu.memory_space<vmem>>, vector<128x128xbf16>
    %cst_21 = arith.constant dense<0.000000e+00> : vector<128x128xf32>
    %34 = tpu.matmul %32, %33, %cst_21 {dimension_numbers = #tpu.dot_dimension_numbers<[1], [0], [0], [1], [0, 0, 1, 1], [], []>} : vector<128x128xbf16>, vector<128x128xbf16>, vector<128x128xf32> -> vector<128x128xf32>
    %cst_22 = arith.constant 9.99999971E-10 : f32
    %35 = vector.broadcast %cst_22 : f32 to vector<128x128xf32>
    %36 = arith.addf %34, %35 : vector<128x128xf32>
    %37 = tpu.reciprocal %36 {approx = true} : vector<128x128xf32> -> vector<128x128xf32>
    %38 = arith.mulf %31, %37 : vector<128x128xf32>
    %39 = arith.truncf %38 : vector<128x128xf32> to vector<128x128xbf16>
    %c0_23 = arith.constant 0 : index
    %c0_24 = arith.constant 0 : index
    %c0_25 = arith.constant 0 : index
    %40 = vector.load %arg6[%c0_23, %c0_24, %c0_25] : memref<1x128x128xbf16, #tpu.memory_space<vmem>>, vector<1x128x128xbf16>
    %41 = vector.shape_cast %40 : vector<1x128x128xbf16> to vector<128x128xbf16>
    %cst_26 = arith.constant dense<0.000000e+00> : vector<128x128xf32>
    %42 = tpu.matmul %39, %41, %cst_26 {dimension_numbers = #tpu.dot_dimension_numbers<[1], [0], [0], [1], [0, 0, 1, 1], [], []>} : vector<128x128xbf16>, vector<128x128xbf16>, vector<128x128xf32> -> vector<128x128xf32>
    %43 = vector.shape_cast %42 : vector<128x128xf32> to vector<2x64x128xf32>
    %44 = arith.truncf %43 : vector<2x64x128xf32> to vector<2x64x128xbf16>
    %c0_27 = arith.constant 0 : index
    %c0_28 = arith.constant 0 : index
    %c0_29 = arith.constant 0 : index
    %c0_30 = arith.constant 0 : index
    %45 = vector.load %arg9[%c0_27, %c0_28, %c0_29, %c0_30] : memref<1x2x64x128xbf16, #tpu.memory_space<vmem>>, vector<1x2x64x128xbf16>
    %46 = vector.shape_cast %45 : vector<1x2x64x128xbf16> to vector<2x64x128xbf16>
    %47 = vector.shape_cast %44 : vector<2x64x128xbf16> to vector<1x2x64x128xbf16>
    tpu.vector_store %arg9[%c0_27, %c0_28, %c0_29, %c0_30], %47 {strides = array<i32>} : memref<1x2x64x128xbf16, #tpu.memory_space<vmem>>, vector<1x2x64x128xbf16>,
    %cst_31 = arith.constant dense<0.000000e+00> : vector<2x128xf32>
    %48 = vector.multi_reduction <add>, %11, %cst_31 [1] : vector<2x64x128xf32> to vector<2x128xf32>
    %cst_32 = arith.constant 1.562500e-02 : f32
    %49 = vector.broadcast %cst_32 : f32 to vector<2x128xf32>
    %50 = arith.mulf %48, %49 : vector<2x128xf32>
    %c0_33 = arith.constant 0 : index
    %c0_34 = arith.constant 0 : index
    %c0_35 = arith.constant 0 : index
    %51 = vector.load %arg10[%c0_33, %c0_34, %c0_35] : memref<1x2x128xf32, #tpu.memory_space<vmem>>, vector<1x2x128xf32>
    %52 = vector.shape_cast %51 : vector<1x2x128xf32> to vector<2x128xf32>
    %53 = vector.shape_cast %50 : vector<2x128xf32> to vector<1x2x128xf32>
    tpu.vector_store %arg10[%c0_33, %c0_34, %c0_35], %53 {strides = array<i32>} : memref<1x2x128xf32, #tpu.memory_space<vmem>>, vector<1x2x128xf32>,
    return
  }
  func.func @transform_0(%arg0: i32, %arg1: i32) -> (i32, i32, i32) {
    %c0_i32 = arith.constant 0 : i32
    %c0_i32_0 = arith.constant 0 : i32
    %c0_i32_1 = arith.constant 0 : i32
    return %arg0, %c0_i32, %c0_i32_0 : i32, i32, i32
  }
  func.func @transform_1(%arg0: i32, %arg1: i32) -> (i32, i32, i32) {
    %c0_i32 = arith.constant 0 : i32
    %c0_i32_0 = arith.constant 0 : i32
    %c0_i32_1 = arith.constant 0 : i32
    return %arg1, %c0_i32, %c0_i32_0 : i32, i32, i32
  }
  func.func @transform_2(%arg0: i32, %arg1: i32) -> (i32, i32, i32) {
    %c0_i32 = arith.constant 0 : i32
    %c0_i32_0 = arith.constant 0 : i32
    %c0_i32_1 = arith.constant 0 : i32
    return %arg1, %c0_i32, %c0_i32_0 : i32, i32, i32
  }
  func.func @transform_3(%arg0: i32, %arg1: i32) -> (i32, i32, i32) {
    %c0_i32 = arith.constant 0 : i32
    %c0_i32_0 = arith.constant 0 : i32
    %c0_i32_1 = arith.constant 0 : i32
    return %arg1, %c0_i32, %c0_i32_0 : i32, i32, i32
  }
  func.func @transform_4(%arg0: i32, %arg1: i32) -> (i32, i32, i32) {
    %c0_i32 = arith.constant 0 : i32
    %c0_i32_0 = arith.constant 0 : i32
    %c0_i32_1 = arith.constant 0 : i32
    return %arg1, %c0_i32, %c0_i32_0 : i32, i32, i32
  }
  func.func @transform_5(%arg0: i32, %arg1: i32) -> (i32, i32) {
    %c0_i32 = arith.constant 0 : i32
    %c0_i32_0 = arith.constant 0 : i32
    %c0_i32_1 = arith.constant 0 : i32
    return %c0_i32, %c0_i32_0 : i32, i32
  }
  func.func @transform_6(%arg0: i32, %arg1: i32) -> (i32, i32, i32, i32) {
    %c0_i32 = arith.constant 0 : i32
    %c0_i32_0 = arith.constant 0 : i32
    %c0_i32_1 = arith.constant 0 : i32
    return %arg1, %arg0, %c0_i32, %c0_i32_0 : i32, i32, i32, i32
  }
  func.func @transform_7(%arg0: i32, %arg1: i32) -> (i32, i32, i32, i32) {
    %c0_i32 = arith.constant 0 : i32
    %c0_i32_0 = arith.constant 0 : i32
    %c0_i32_1 = arith.constant 0 : i32
    return %arg1, %arg0, %c0_i32, %c0_i32_0 : i32, i32, i32, i32
  }
  func.func @transform_8(%arg0: i32, %arg1: i32) -> (i32, i32, i32) {
    %c0_i32 = arith.constant 0 : i32
    %c0_i32_0 = arith.constant 0 : i32
    return %arg1, %arg0, %c0_i32 : i32, i32, i32
  }
}

</mosaic_0001>

<bundles_post_ra>
// kernel: tpu_custom_call.1
= control target key start
LH: loop header
LB: loop body
LE: loop exit
PB: predicated region body
PF: predicated region fallthrough
CT: control target
= control target key end

     0   :  { %s3126_s0 = inlined_call_operand.vmem [shape: bf16[2,64,8], index: 0, kind: input, shape index: {}]   ;;  %s3127_s1 = inlined_call_operand.vmem [shape: bf16[3,8,128], index: 1, kind: input, shape index: {}]   ;;  %s3128_s2 = inlined_call_operand.vmem [shape: f32[3,1,128], index: 2, kind: input, shape index: {}]   ;;  %s3129_s3 = inlined_call_operand.hbm [shape: bf16[3,128,128], index: 3, kind: input, shape index: {}]   ;;  %s3130_s4 = inlined_call_operand.hbm [shape: bf16[3,128,128], index: 4, kind: input, shape index: {}]   ;;  %s3131_s5 = inlined_call_operand.vmem [shape: bf16[128,128], index: 5, kind: input, shape index: {}]   ;;  %s3132_s6 = inlined_call_operand.hbm [shape: bf16[3,2,64,128], index: 6, kind: output, shape index: {0}]   ;;  %s3133_s7 = inlined_call_operand.hbm [shape: bf16[3,2,64,128], index: 7, kind: output, shape index: {1}]   ;;  %s3134_s8 = inlined_call_operand.hbm [shape: f32[3,2,128], index: 8, kind: output, shape index: {2}]  }
   0x1   :  { %3142 = sst [smem:[#allocation20_spill]] %s3129_s3 }
   0x2   :  { %3143 = sst [smem:[#allocation21_spill]] %s3134_s8 }
   0x3   :  { %14 = vsyncpa [#allocation3], 0 }
   0x4   :  { %16 = vsyncpa [#allocation3 + $0x1], 0 }
   0x5   :  { %17 = vsyncpa [#allocation6], 0 }
   0x6   :  { %19 = vsyncpa [#allocation6 + $0x1], 0 }
   0x7   :  { %20 = vsyncpa [#allocation4], 0 }
   0x8   :  { %22 = vsyncpa [#allocation4 + $0x1], 0 }
   0x9   :  { %23 = vsyncpa [#allocation9], 0 }
   0xa   :  { %25 = vsyncpa [#allocation9 + $0x1], 0  ;;  %s2628_s27 = smov 0   ;;  %s2630_s28 = smov 0  }
   0xb   :  { %s2632_s29 = smov 0   ;;  %s2634_s30 = smov 0  }
   0xc   :  { %s2636_s9 = smov 0   ;;  %s2638_s10 = smov 0  }
   0xd LB: > { %3144 = sst [smem:[#allocation15_spill]] %s2552_s27  ;;  %s2659_s11 = sadd.s32 4294967295, %s2572_s10   ;;  %s2572_s10 = sphi %s2638_s10, %s31_s10   ;;  %s2568_s9 = sphi %s2636_s9, %s3167_s9   ;;  %s2564_s30 = sphi %s2634_s30, %s3166_s30   ;;  %s2560_s29 = sphi %s2632_s29, %s3162_s29   ;;  %s2556_s28 = sphi %s2630_s28, %s3165_s28   ;;  %s2552_s27 = sphi %s2628_s27, %s3164_s27  }
   0xe   : > { %3145 = sst [smem:[#allocation16_spill]] %s2560_s29  ;;  %s3135_s12 = sadd.s32 4294967294, %s2572_s10  }
   0xf   : > { %s40_s13 = sadd.s32 1, %s2568_s9  ;;  %s128_s14 = sadd.s32 1, %s2560_s29 }
  0x10   : > { %p41_p0 = scmp.ge.s32.totalorder %s40_s13, 3  ;;  %p135_p1 = scmp.ne.s32.totalorder %s2560_s29, %s2556_s28 }
  0x11   : > { %p136_p2 = scmp.eq.s32.totalorder %s2572_s10, 0  ;;  %p141_p3 = scmp.ne.s32.totalorder %s2556_s28, %s2552_s27 }
  0x12   : > { %s3169_s13 = smov (%p41_p0, %s40_s13), 0  ;;  %p142_p5 = scmp.eq.s32.totalorder %s2659_s11, 0 }
  0x13   : > { %3146 = sst [smem:[#allocation17_spill]] %s3169_s13  ;;  %p2671_p4 = por %p136_p2, %p135_p1 }
  0x14   : > { %s125_s16 = ssub.s32 %s2568_s9, %s3169_s13  ;;  %p214_p6 = scmp.eq.s32.totalorder %s2659_s11, 2 }
  0x15   : > { %p126_p7 = scmp.eq.s32.totalorder %s125_s16, 0  ;;  %p2679_p8 = por %p142_p5, %p141_p3 }
  0x16   : > { %p2683_p9 = por %p214_p6, %p135_p1  ;;  %p220_p10 = scmp.eq.s32.totalorder %s3135_s12, 2 }
  0x17   : > { %s2690_s19 = scalar_select %p126_p7, %s2560_s29, %s128_s14  }
  0x18   : > { %p2692_p11 = por %p220_p10, %p141_p3  ;;  %p2222_p12 = scmp.lt.s32.totalorder %s2572_s10, 3 }
  0x19   : > { %3150 = sst [smem:[#allocation18_spill]] %s2690_s19  ;;  %s2698_s21 = sand.u32 1, %s2560_s29  }
  0x1a   : > { %s3151_s20 = scalar_select %p2692_p11, 1, 0 }
  0x1b   : > { %s3137_s22 = sshll.u32 %s2698_s21, 6  ;;  %s1877_s23 = sshll.u32 %s2568_s9, 10 }
  0x1c   : > { %3152 = sst [smem:[#allocation19_spill]] %s3151_s20  ;;  %s326_s14 = scalar_lea.vmem [#allocation2], %s3137_s22 }
  0x1d   : > { %s3153_s3 = sld [smem:[#allocation20_spill]]  ;;  %s333_s16 = sshll.u32 %s326_s14, 4  ;;  %s334_s16 = int_to_ptr.vmem [resolvable:$true] %s333_s16 }
  0x1e   : > { %p2711_p13 = pnand %p2222_p12, %p2671_p4  ;;  %p1787_p0 = scmp.ge.s32.totalorder %s2572_s10, 1 }
  0x1f   : > { %s323_s13 = scalar_lea.sflag [#allocation3], %s2698_s21  ;;  %s2389_s19 = scalar_lea.vmem %s334_s16, 1024 }
  0x20   : > { %p2378_p1 = pneg %p2711_p13  ;;  %p2390_p2 = scmp.ne.s32.totalorder %s334_s16, %s2389_s19 }
  0x21   : > { %s2574_s24 = smov [#allocation2]  }
  0x22   : > { %p2392_p3 = pnand %p2390_p2, %p2378_p1  ;;  %s2394_s25 = sshll.u32 %s2574_s24, 4  ;;  %s2395_s25 = int_to_ptr.vmem [resolvable:$false] %s2394_s25 }
  0x23   : > { %s332_s26 = scalar_lea.hbm %s3153_s3, %s1877_s23  ;;  %s2396_s15 = scalar_lea.vmem %s2395_s25, 2048 }
  0x24   : > { %p2393_p5 = pneg %p2392_p3  ;;  %p2397_p4 = scmp.lt.s32.totalorder %s334_s16, %s2395_s25 }
  0x25   : > { %p2398_p6 = scmp.lt.s32.totalorder %s2396_s15, %s2389_s19 }
  0x27   : > { %p2399_p7 = por %p2398_p6, %p2397_p4 }
  0x29   : > { %p2400_p10 = pnand %p2399_p7, %p2393_p5 }
  0x2b   : > { %2403 = shalt.err (!%p2400_p10)
}
  0x2c   : > { %s2575_s14 = smov 64   ;;  %s2576_s22 = smov 4  }
  0x2d   : > { %2208 = dma.hbm_to_vmem [thread:$0]  (!%p2711_p13), %s332_s26, 1024, %s334_s16, %s323_s13, %s2575_s14, %s2575_s14, %s2576_s22  }
  0x2e   : > { %p362_p12 = scmp.lt.s32.totalorder %s2572_s10, 4  ;;  %s353_s19 = scalar_lea.hbm %s3130_s4, %s1877_s23 }
  0x2f   : > { %s3156_s15 = sshll.u32 %s2698_s21, 6  ;;  %s344_s27 = scalar_lea.sflag [#allocation6], %s2698_s21 }
  0x30   : > { %p2732_p2 = pnand %p1787_p0, %p362_p12  ;;  %s347_s29 = scalar_lea.vmem [#allocation5], %s3156_s15 }
  0x31   : > { %s354_s20 = sshll.u32 %s347_s29, 4  ;;  %s2577_s13 = smov [#allocation5]   ;;  %s355_s20 = int_to_ptr.vmem [resolvable:$true] %s354_s20 }
  0x32   : > { %s2417_s8 = scalar_lea.vmem %s355_s20, 1024  ;;  %s2422_s26 = sshll.u32 %s2577_s13, 4  ;;  %s2423_s26 = int_to_ptr.vmem [resolvable:$false] %s2422_s26 }
  0x33   : > { %p2418_p3 = scmp.ne.s32.totalorder %s355_s20, %s2417_s8  ;;  %s2424_s3 = scalar_lea.vmem %s2423_s26, 2048 }
  0x34   : > { %p2425_p6 = scmp.lt.s32.totalorder %s355_s20, %s2423_s26  ;;  %p2426_p0 = scmp.lt.s32.totalorder %s2424_s3, %s2417_s8 }
  0x35   : > { %p2420_p5 = pnand %p2418_p3, %p2378_p1 }
  0x36   : > { %p2427_p7 = por %p2426_p0, %p2425_p6 }
  0x37   : > { %p2421_p4 = pneg %p2420_p5 }
  0x39   : > { %p2428_p10 = pnand %p2427_p7, %p2421_p4 }
  0x3b   : > { %2431 = shalt.err (!%p2428_p10)
}
  0x3c   : > { %2211 = dma.hbm_to_vmem [thread:$0]  (!%p2711_p13), %s353_s19, 1024, %s355_s20, %s344_s27, %s2575_s14, %s2575_s14, %s2576_s22  }
  0x3d   : > { %366 = sbr.rel (%p2732_p2) target bundleno = 1055 (0x41f), region = 44  ;;  %s2747_s29 = sand.u32 (!%p2732_p2), 1, %s2556_s28  }
  0x3e   : > { %s2750_s21 = sshll.u32 (!%p2732_p2), %s2747_s29, 6  ;;  %s369_s23 = scalar_lea.sflag (!%p2732_p2), [#allocation3], %s2747_s29 }
  0x3f   : > { %s2754_s8 = scalar_lea.vmem (!%p2732_p2), [#allocation2], %s2750_s21 }
  0x42   : > { %2535 = dma.done.wait (%p2679_p8), %s369_s23, 1024  }
  0x43   : > { %2537 = vsyncadd (%p2679_p8), %s369_s23, 4294966272  ;;  %s378_s27 = scalar_lea.sflag [#allocation6], %s2747_s29  ;;  %s2762_s12 = scalar_lea.vmem [#allocation5], %s2750_s21 }
  0x44   : > { %2539 = dma.done.wait (%p2679_p8), %s378_s27, 1024  }
  0x45   : > { %2541 = vsyncadd (%p2679_p8), %s378_s27, 4294966272  ;;  %p449_p13 = scmp.lt.s32.totalorder %s2564_s30, 2  ;;  %vm548_vm0 = vcmask 1043456   ;;  %vm523_vm1 = vcmask 64512   ;;  %v2276_v2 = vld [vmem:[%s3126_s0] sm:$0xff]   ;;  %v2277_v3 = vld [vmem:[%s3126_s0 + $0x8] sm:$0xff]  }
  0x46   : > { %2066 = vmatprep.mubr.msk.bf16.mxu0 %vm523_vm1, %v2276_v2  ;;  %v2278_v4 = vld [vmem:[%s3126_s0 + $0x10] sm:$0xff]   ;;  %v2279_v5 = vld [vmem:[%s3126_s0 + $0x18] sm:$0xff]   ;;  %v2280_v6 = vld [vmem:[%s3126_s0 + $0x20] sm:$0xff]   ;;  %vm1504_vm2 = vcmask 1041409   ;;  %s1911_s16 = sshll.u32 %s2564_s30, 10  ;;  %s1509_s19 = scalar_lea.sflag [#allocation4], %s2747_s29 }
  0x47   : > { %s2770_s20 = scalar_select %p449_p13, %s2564_s30, 2  ;;  %v2284_v7 = vld [vmem:[%s2754_s8 + $0x38] sm:$0xff]   ;;  %v2285_v8 = vld [vmem:[%s2754_s8 + $0x30] sm:$0xff]   ;;  %v2286_v9 = vld [vmem:[%s2754_s8 + $0x28] sm:$0xff]  }
  0x48   : > { %2082 = vmatprep.subr.bf16.mxu1 %v2284_v7  ;;  %v2281_v10 = vld [vmem:[%s3126_s0 + $0x28] sm:$0xff]   ;;  %v2287_v11 = vld [vmem:[%s2754_s8 + $0x20] sm:$0xff]   ;;  %v2282_v12 = vld [vmem:[%s3126_s0 + $0x30] sm:$0xff]   ;;  %s2996_s17 = scalar_lea.hbm %s3132_s6, %s1911_s16  ;;  %s2578_s15 = smov [#allocation7]  }
  0x49   : > { %s1793_s22 = sshll.u32 %s2770_s20, 2  ;;  %2083 = vmatpush3.bf16.msra.mxu1 %v2284_v7  ;;  %v2288_v13 = vld [vmem:[%s2754_s8 + $0x18] sm:$0xff]   ;;  %v2289_v15 = vld [vmem:[%s2754_s8 + $0x10] sm:$0xff]   ;;  %v2290_v16 = vld [vmem:[%s2754_s8 + $0x8] sm:$0xff]   ;;  %s455_s26 = scalar_lea.vmem %s3128_s2, %s2770_s20 }
  0x4a   : > { %s452_s24 = scalar_lea.vmem %s3127_s1, %s1793_s22  ;;  %2084 = vmatprep.subr.bf16.mxu1 %v2285_v8  ;;  %v2283_v14 = vld [vmem:[%s3126_s0 + $0x38] sm:$0xff]   ;;  %v2291_v17 = vld [vmem:[%s2754_s8] sm:$0xff]   ;;  %s2828_s8 = scalar_lea.vmem [#allocation7], %s2750_s21 }
  0x4b   : > { %v475_v0 = vld [vmem:[%s452_s24] sm:$0xf]  ;;  %s1792_s20 = sshll.u32 %s2747_s29, 1 }
  0x4c   : > { %2194 = vmatprep.subr.msk.bf16.mxu0 %vm548_vm0, %v475_v0  ;;  %v550_v1 = vsel %vm548_vm0, %v475_v0, 0  ;;  %v2820_v18 = vld [vmem:[%s455_s26] ss:$0 sm:$0xff]  ;;  %s2850_s3 = scalar_lea.vmem [#allocation10], %s1792_s20 }
  0x4d   : > { %2065 = vmatpush3.bf16.msra.mxu0 %v550_v1  ;;  %2085 = vmatpush3.bf16.msra.mxu1 %v2285_v8 }
  0x4e   : > { %2086 = vmatprep.subr.bf16.mxu1 %v2286_v9 }
  0x50   : > { %2067 = vmatmul.mubr.msk.bf16.vlgmr.msra.gmra.mxu0 %vm523_vm1, %v2277_v3 }
  0x51   : > { %2070 = vmatprep.mubr.msk.bf16.mxu0 %vm523_vm1, %v2278_v4  ;;  %2087 = vmatpush3.bf16.msra.mxu1 %v2286_v9 }
  0x52   : > { %2088 = vmatprep.subr.bf16.mxu1 %v2287_v11 }
  0x55   : > { %2089 = vmatpush3.bf16.msra.mxu1 %v2287_v11 }
  0x56   : > { %2090 = vmatprep.subr.bf16.mxu1 %v2288_v13 }
  0x58   : > { %2071 = vmatmul.mubr.msk.bf16.gmra.mxu0 %vm523_vm1, %v2279_v5 }
  0x59   : > { %2074 = vmatprep.mubr.msk.bf16.mxu0 %vm523_vm1, %v2280_v6  ;;  %2091 = vmatpush3.bf16.msra.mxu1 %v2288_v13 }
  0x5a   : > { %2092 = vmatprep.subr.bf16.mxu1 %v2289_v15 }
  0x5d   : > { %2093 = vmatpush3.bf16.msra.mxu1 %v2289_v15 }
  0x5e   : > { %2094 = vmatprep.subr.bf16.mxu1 %v2290_v16 }
  0x60   : > { %2075 = vmatmul.mubr.msk.bf16.gmra.mxu0 %vm523_vm1, %v2281_v10 }
  0x61   : > { %2078 = vmatprep.mubr.msk.bf16.mxu0 %vm523_vm1, %v2282_v12  ;;  %2095 = vmatpush3.bf16.msra.mxu1 %v2290_v16 }
  0x62   : > { %2096 = vmatprep.subr.bf16.mxu1 %v2291_v17 }
  0x65   : > { %2097 = vmatpush3.bf16.msra.mxu1 %v2291_v17 }
  0x68   : > { %2079 = vmatmul.mubr.msk.bf16.gmra.mxu0 %vm523_vm1, %v2283_v14 }
 0x110   : > { %v2068_v19 = vpop.f32.mrf.mxu0 }
 0x111   : > { %v595_v21 = vadd.f32 %v2068_v19, %v2820_v18 }
 0x112   : > { %v586_v20 = vpop.f32.mrf.mxu0 }
 0x113   : > { %v587_v23 = vadd.f32 %v2820_v18, %v586_v20  ;;  %v651_v26 = vmax.f32 %v595_v21, 0.0 }
 0x114   : > { %v2069_v22 = vpop.f32.mrf.mxu0 }
 0x115   : > { %v598_v24 = vadd.f32 %v2069_v22, %v2820_v18  ;;  %v649_v30 = vmax.f32 %v587_v23, 0.0 }
 0x116   : > { %v589_v25 = vpop.f32.mrf.mxu0 }
 0x117   : > { %v652_v27 = vmax.f32 %v598_v24, 0.0  ;;  %v590_v28 = vadd.f32 %v2820_v18, %v589_v25 }
 0x118   : > { %v2072_v29 = vpop.f32.mrf.mxu0 }
 0x119   : > { %v666_v31 = vpack.c.bf16 %v652_v27, %v651_v26  ;;  %v650_v32 = vmax.f32 %v590_v28, 0.0  ;;  %v611_v33 = vadd.f32 %v2072_v29, %v2820_v18 }
 0x11a   : > { %v602_v34 = vpop.f32.mrf.mxu0 }
 0x11b   : > { %1993 = vst [vmem:[%s2828_s8 + $0x8] sm:$0xff] %v666_v31   ;;  %v1474_v35 = vadd.f32 %v650_v32, %v649_v30  ;;  %v603_v36 = vadd.f32 %v2820_v18, %v602_v34  ;;  %v665_v37 = vpack.c.bf16 %v650_v32, %v649_v30  ;;  %v655_v41 = vmax.f32 %v611_v33, 0.0 }
 0x11c   : > { %v2073_v38 = vpop.f32.mrf.mxu0 }
 0x11d   : > { %v1475_v39 = vadd.f32 %v1474_v35, %v651_v26  ;;  %v614_v40 = vadd.f32 %v2073_v38, %v2820_v18  ;;  %1917 = vst [vmem:[%s2828_s8] sm:$0xff] %v665_v37   ;;  %2098 = vmatprep.mubr.bf16.mxu1 %v665_v37  ;;  %v653_v43 = vmax.f32 %v603_v36, 0.0 }
 0x11e   : > { %v605_v42 = vpop.f32.mrf.mxu0  ;;  %2099 = vmatmul.mubr.bf16.vlgmr.msra.gmra.mxu1 %v666_v31 }
 0x11f   : > { %v1476_v44 = vadd.f32 %v1475_v39, %v652_v27  ;;  %v656_v45 = vmax.f32 %v614_v40, 0.0  ;;  %v606_v46 = vadd.f32 %v2820_v18, %v605_v42  ;;  %v2292_v40 = vld [vmem:[%s3131_s5 + $0x38] sm:$0xff]   ;;  %v2294_v42 = vld [vmem:[%s3131_s5 + $0x28] sm:$0xff]  }
 0x120   : > { %v2076_v47 = vpop.f32.mrf.mxu0  ;;  %2114 = vmatprep.subr.bf16.mxu0 %v2292_v40 }
 0x121   : > { %v1477_v48 = vadd.f32 %v1476_v44, %v653_v43  ;;  %v668_v49 = vpack.c.bf16 %v656_v45, %v655_v41  ;;  %v654_v50 = vmax.f32 %v606_v46, 0.0  ;;  %v627_v54 = vadd.f32 %v2076_v47, %v2820_v18  ;;  %2115 = vmatpush3.bf16.msra.mxu0 %v2292_v40  ;;  %v2296_v44 = vld [vmem:[%s3131_s5 + $0x18] sm:$0xff]   ;;  %v2298_v46 = vld [vmem:[%s3131_s5 + $0x8] sm:$0xff]   ;;  %v2299_v47 = vld [vmem:[%s3131_s5] sm:$0xff]  }
 0x122   : > { %v618_v51 = vpop.f32.mrf.mxu0 }
 0x123   : > { %1995 = vst [vmem:[%s2828_s8 + $0x18] sm:$0xff] %v668_v49   ;;  %v667_v52 = vpack.c.bf16 %v654_v50, %v653_v43  ;;  %v1478_v53 = vadd.f32 %v1477_v48, %v654_v50  ;;  %v619_v57 = vadd.f32 %v2820_v18, %v618_v51  ;;  %v659_v60 = vmax.f32 %v627_v54, 0.0  ;;  %v2295_v43 = vld [vmem:[%s3131_s5 + $0x20] sm:$0xff]   ;;  %v2878_v48 = vld [vmem:[%s2762_s12 + $0x38] sm:$0xff]  }
 0x124   : > { %v2077_v55 = vpop.f32.mrf.mxu0  ;;  %2178 = vmatprep.subr.bf16.mxu1 %v2878_v48 }
 0x125   : > { %1994 = vst [vmem:[%s2828_s8 + $0x10] sm:$0xff] %v667_v52   ;;  %v1479_v56 = vadd.f32 %v1478_v53, %v655_v41  ;;  %v630_v58 = vadd.f32 %v2077_v55, %v2820_v18  ;;  %2102 = vmatprep.mubr.bf16.mxu1 %v667_v52  ;;  %v657_v1 = vmax.f32 %v619_v57, 0.0  ;;  %v2293_v41 = vld [vmem:[%s3131_s5 + $0x30] sm:$0xff]   ;;  %2186 = vmatpush3.bf16.msra.mxu1 %v2878_v48 }
 0x126   : > { %v621_v59 = vpop.f32.mrf.mxu0  ;;  %2103 = vmatmul.mubr.bf16.gmra.mxu1 %v668_v49  ;;  %2116 = vmatprep.subr.bf16.mxu0 %v2293_v41 }
 0x127   : > { %v660_v61 = vmax.f32 %v630_v58, 0.0  ;;  %v622_v62 = vadd.f32 %v2820_v18, %v621_v59  ;;  %v1480_v0 = vadd.f32 %v1479_v56, %v656_v45  ;;  %2117 = vmatpush3.bf16.msra.mxu0 %v2293_v41  ;;  %v2297_v45 = vld [vmem:[%s3131_s5 + $0x10] sm:$0xff]  }
 0x128   : > { %v2080_v63 = vpop.f32.mrf.mxu0  ;;  %2118 = vmatprep.subr.bf16.mxu0 %v2294_v42 }
 0x129   : > { %v670_v2 = vpack.c.bf16 %v660_v61, %v659_v60  ;;  %v658_v3 = vmax.f32 %v622_v62, 0.0  ;;  %v643_v4 = vadd.f32 %v2080_v63, %v2820_v18  ;;  %v1481_v10 = vrot.slane %v1480_v0, 4 }
 0x12a   : > { %v634_v5 = vpop.f32.mrf.mxu0 }
 0x12b   : > { %1997 = vst [vmem:[%s2828_s8 + $0x28] sm:$0xff] %v670_v2   ;;  %v669_v6 = vpack.c.bf16 %v658_v3, %v657_v1  ;;  %v1487_v7 = vadd.f32 %v658_v3, %v657_v1  ;;  %v635_v8 = vadd.f32 %v2820_v18, %v634_v5  ;;  %v663_v13 = vmax.f32 %v643_v4, 0.0  ;;  %2119 = vmatpush3.bf16.msra.mxu0 %v2294_v42 }
 0x12c   : > { %v2081_v9 = vpop.f32.mrf.mxu0  ;;  %v1482_v20 = vadd.f32 %v1481_v10, %v1480_v0  ;;  %2120 = vmatprep.subr.bf16.mxu0 %v2295_v43 }
 0x12d   : > { %1996 = vst [vmem:[%s2828_s8 + $0x20] sm:$0xff] %v669_v6   ;;  %v1488_v11 = vadd.f32 %v1487_v7, %v659_v60  ;;  %v646_v12 = vadd.f32 %v2081_v9, %v2820_v18  ;;  %2106 = vmatprep.mubr.bf16.mxu1 %v669_v6  ;;  %v661_v15 = vmax.f32 %v635_v8, 0.0 }
 0x12e   : > { %v637_v14 = vpop.f32.mrf.mxu0  ;;  %2107 = vmatmul.mubr.bf16.gmra.mxu1 %v670_v2  ;;  %v1483_v26 = vrot.slane %v1482_v20, 2 }
 0x12f   : > { %v1489_v16 = vadd.f32 %v1488_v11, %v660_v61  ;;  %v664_v17 = vmax.f32 %v646_v12, 0.0  ;;  %v638_v19 = vadd.f32 %v2820_v18, %v637_v14  ;;  %2121 = vmatpush3.bf16.msra.mxu0 %v2295_v43 }
 0x130   : > { %v1484_v29 = vadd.f32 %v1483_v26, %v1482_v20  ;;  %2122 = vmatprep.subr.bf16.mxu0 %v2296_v44 }
 0x131   : > { %v1490_v21 = vadd.f32 %v1489_v16, %v661_v15  ;;  %v672_v22 = vpack.c.bf16 %v664_v17, %v663_v13  ;;  %v662_v23 = vmax.f32 %v638_v19, 0.0 }
 0x132   : > { %v1485_v32 = vrot.slane %v1484_v29, 1 }
 0x133   : > { %1999 = vst [vmem:[%s2828_s8 + $0x38] sm:$0xff] %v672_v22   ;;  %v671_v24 = vpack.c.bf16 %v662_v23, %v661_v15  ;;  %v1491_v25 = vadd.f32 %v1490_v21, %v662_v23  ;;  %2123 = vmatpush3.bf16.msra.mxu0 %v2296_v44 }
 0x134   : > { %v1486_v34 = vadd.f32 %v1485_v32, %v1484_v29  ;;  %2124 = vmatprep.subr.bf16.mxu0 %v2297_v45 }
 0x135   : > { %1998 = vst [vmem:[%s2828_s8 + $0x30] sm:$0xff] %v671_v24   ;;  %v1492_v27 = vadd.f32 %v1491_v25, %v663_v13  ;;  %2110 = vmatprep.mubr.bf16.mxu1 %v671_v24 }
 0x136   : > { %2111 = vmatmul.mubr.bf16.gmra.mxu1 %v672_v22  ;;  %v1500_v37 = vmul.f32 0.015625, %v1486_v34 }
 0x137   : > { %v1493_v28 = vadd.f32 %v1492_v27, %v664_v17  ;;  %2125 = vmatpush3.bf16.msra.mxu0 %v2297_v45 }
 0x138   : > { %2126 = vmatprep.subr.bf16.mxu0 %v2298_v46 }
 0x139   : > { %v1494_v30 = vrot.slane %v1493_v28, 4 }
 0x13b   : > { %v1495_v31 = vadd.f32 %v1494_v30, %v1493_v28  ;;  %2127 = vmatpush3.bf16.msra.mxu0 %v2298_v46 }
 0x13c   : > { %2128 = vmatprep.subr.bf16.mxu0 %v2299_v47 }
 0x13d   : > { %v1496_v33 = vrot.slane %v1495_v31, 2 }
 0x13f   : > { %v1497_v18 = vadd.f32 %v1496_v33, %v1495_v31  ;;  %2129 = vmatpush3.bf16.msra.mxu0 %v2299_v47 }
 0x140   : > { %2146 = vmatprep.subr.bf16.mxu0 %v2878_v48 }
 0x141   : > { %v1498_v35 = vrot.slane %v1497_v18, 1 }
 0x143   : > { %v1499_v36 = vadd.f32 %v1498_v35, %v1497_v18 }
 0x145   : > { %v1501_v38 = vmul.f32 0.015625, %v1499_v36 }
 0x147   : > { %v1505_v39 = vsel %vm1504_vm2, %v1501_v38, %v1500_v37 }
 0x148   : > { %1507 = vst [vmem:[%s2850_s3] sm:$0x3] %v1505_v39 }
 0x1de   : > { %v2100_v49 = vpop.f32.mrf.mxu1 }
 0x1e0   : > { %v843_v50 = vpop.f32.mrf.mxu1 }
 0x1e1   : > { %v906_v55 = vmax.f32 %v843_v50, %v2100_v49 }
 0x1e2   : > { %v2101_v51 = vpop.f32.mrf.mxu1 }
 0x1e4   : > { %v846_v52 = vpop.f32.mrf.mxu1 }
 0x1e5   : > { %v907_v57 = vmax.f32 %v846_v52, %v2101_v51 }
 0x1e6   : > { %v2104_v53 = vpop.f32.mrf.mxu1 }
 0x1e8   : > { %v859_v54 = vpop.f32.mrf.mxu1 }
 0x1e9   : > { %v908_v58 = vmax.f32 %v906_v55, %v859_v54 }
 0x1ea   : > { %v2105_v56 = vpop.f32.mrf.mxu1 }
 0x1eb   : > { %v910_v62 = vmax.f32 %v908_v58, %v2104_v53 }
 0x1ec   : > { %v862_v59 = vpop.f32.mrf.mxu1 }
 0x1ed   : > { %v909_v60 = vmax.f32 %v907_v57, %v862_v59 }
 0x1ee   : > { %v2883_v61 = vpop.f32.mrf.mxu1 }
 0x1ef   : > { %v911_v63 = vmax.f32 %v909_v60, %v2105_v56 }
 0x1f0   : > { %v875_v0 = vpop.f32.mrf.mxu1 }
 0x1f1   : > { %v912_v1 = vmax.f32 %v910_v62, %v911_v63  ;;  %v919_v12 = vmax.f32 %v875_v0, %v2883_v61 }
 0x1f2   : > { %v2885_v2 = vpop.f32.mrf.mxu1 }
 0x1f3   : > { %v913_v3 = vrot.slane %v912_v1, 4 }
 0x1f4   : > { %v878_v4 = vpop.f32.mrf.mxu1 }
 0x1f5   : > { %v914_v5 = vmax.f32 %v912_v1, %v913_v3  ;;  %v920_v13 = vmax.f32 %v878_v4, %v2885_v2 }
 0x1f6   : > { %v2887_v6 = vpop.f32.mrf.mxu1 }
 0x1f7   : > { %v915_v7 = vrot.slane %v914_v5, 2 }
 0x1f8   : > { %v2889_v8 = vpop.f32.mrf.mxu1 }
 0x1f9   : > { %v916_v9 = vmax.f32 %v914_v5, %v915_v7  ;;  %v921_v16 = vmax.f32 %v919_v12, %v2889_v8 }
 0x1fa   : > { %v2891_v10 = vpop.f32.mrf.mxu1 }
 0x1fb   : > { %v917_v11 = vrot.slane %v916_v9, 1  ;;  %v923_v25 = vmax.f32 %v921_v16, %v2887_v6 }
 0x1fc   : > { %v2895_v14 = vpop.f32.mrf.mxu1 }
 0x1fd   : > { %v918_v15 = vmax.f32 %v916_v9, %v917_v11  ;;  %v922_v17 = vmax.f32 %v920_v13, %v2895_v14 }
 0x1ff   : > { %v932_v19 = vsub.f32 %v843_v50, %v918_v15  ;;  %v933_v20 = vsub.f32 %v846_v52, %v918_v15  ;;  %v934_v21 = vsub.f32 %v2100_v49, %v918_v15  ;;  %v935_v22 = vsub.f32 %v2101_v51, %v918_v15 }
 0x200   : > { %v924_v26 = vmax.f32 %v922_v17, %v2891_v10  ;;  %v936_v27 = vsub.f32 %v859_v54, %v918_v15  ;;  %v937_v30 = vsub.f32 %v862_v59, %v918_v15  ;;  %v938_v33 = vsub.f32 %v2104_v53, %v918_v15 }
 0x201   : > { %v948_v23 = vmul.f32 1.442695, %v932_v19  ;;  %v950_v24 = vmul.f32 1.442695, %v933_v20  ;;  %v952_v28 = vmul.f32 1.442695, %v934_v21  ;;  %v939_v35 = vsub.f32 %v2105_v56, %v918_v15 }
 0x202   : > { %v925_v29 = vmax.f32 %v923_v25, %v924_v26  ;;  %v954_v31 = vmul.f32 1.442695, %v935_v22  ;;  %v956_v18 = vmul.f32 1.442695, %v936_v27  ;;  %v958_v36 = vmul.f32 1.442695, %v937_v30 }
 0x203   : > { %2308 = vpow2.f32 %v948_v23  ;;  %v960_v38 = vmul.f32 1.442695, %v938_v33  ;;  %v962_v40 = vmul.f32 1.442695, %v939_v35 }
 0x204   : > { %2310 = vpow2.f32 %v950_v24  ;;  %v926_v32 = vrot.slane %v925_v29, 4 }
 0x205   : > { %2312 = vpow2.f32 %v952_v28 }
 0x206   : > { %v927_v34 = vmax.f32 %v925_v29, %v926_v32  ;;  %2314 = vpow2.f32 %v954_v31 }
 0x207   : > { %2316 = vpow2.f32 %v956_v18 }
 0x208   : > { %v928_v37 = vrot.slane %v927_v34, 2  ;;  %2318 = vpow2.f32 %v958_v36 }
 0x209   : > { %2320 = vpow2.f32 %v960_v38 }
 0x20a   : > { %v929_v39 = vmax.f32 %v927_v34, %v928_v37  ;;  %2322 = vpow2.f32 %v962_v40 }
 0x20c   : > { %v930_v41 = vrot.slane %v929_v39, 1 }
 0x20e   : > { %v931_v42 = vmax.f32 %v929_v39, %v930_v41 }
 0x210   : > { %v2901_v43 = vpop.eup %2308  ;;  %v940_v45 = vsub.f32 %v875_v0, %v931_v42  ;;  %v941_v46 = vsub.f32 %v878_v4, %v931_v42  ;;  %v942_v47 = vsub.f32 %v2883_v61, %v931_v42  ;;  %v943_v50 = vsub.f32 %v2885_v2, %v931_v42 }
 0x211   : > { %v2903_v44 = vpop.eup %2310  ;;  %v944_v55 = vsub.f32 %v2889_v8, %v931_v42  ;;  %v945_v59 = vsub.f32 %v2895_v14, %v931_v42  ;;  %v946_v63 = vsub.f32 %v2887_v6, %v931_v42  ;;  %v947_v3 = vsub.f32 %v2891_v10, %v931_v42 }
 0x212   : > { %v980_v49 = vadd.f32 %v2903_v44, %v2901_v43  ;;  %v2313_v51 = vpop.eup %2312  ;;  %v964_v52 = vmul.f32 1.442695, %v940_v45  ;;  %v966_v53 = vmul.f32 1.442695, %v941_v46  ;;  %v968_v56 = vmul.f32 1.442695, %v942_v47 }
 0x213   : > { %v2315_v57 = vpop.eup %2314  ;;  %v970_v60 = vmul.f32 1.442695, %v943_v50  ;;  %v972_v0 = vmul.f32 1.442695, %v944_v55  ;;  %v974_v4 = vmul.f32 1.442695, %v945_v59 }
 0x214   : > { %v981_v54 = vadd.f32 %v2313_v51, %v980_v49  ;;  %2324 = vpow2.f32 %v964_v52  ;;  %v2317_v61 = vpop.eup %2316  ;;  %v976_v8 = vmul.f32 1.442695, %v946_v63  ;;  %v978_v12 = vmul.f32 1.442695, %v947_v3  ;;  %v2304_v3 = vld [vmem:[%s2762_s12 + $0x18] sm:$0xff]  }
 0x215   : > { %2326 = vpow2.f32 %v966_v53  ;;  %v2319_v1 = vpop.eup %2318 }
 0x216   : > { %v982_v58 = vadd.f32 %v2315_v57, %v981_v54  ;;  %2328 = vpow2.f32 %v968_v56  ;;  %v2321_v5 = vpop.eup %2320 }
 0x217   : > { %2330 = vpow2.f32 %v970_v60  ;;  %v2323_v9 = vpop.eup %2322 }
 0x218   : > { %v983_v62 = vadd.f32 %v2317_v61, %v982_v58  ;;  %2332 = vpow2.f32 %v972_v0  ;;  %v2301_v0 = vld [vmem:[%s2762_s12 + $0x30] sm:$0xff]  }
 0x219   : > { %2334 = vpow2.f32 %v974_v4  ;;  %2179 = vmatprep.subr.bf16.mxu1 %v2301_v0  ;;  %v2305_v4 = vld [vmem:[%s2762_s12 + $0x10] sm:$0xff]  }
 0x21a   : > { %v984_v2 = vadd.f32 %v2319_v1, %v983_v62  ;;  %2336 = vpow2.f32 %v976_v8  ;;  %2187 = vmatpush3.bf16.msra.mxu1 %v2301_v0 }
 0x21b   : > { %2338 = vpow2.f32 %v978_v12 }
 0x21c   : > { %v985_v7 = vadd.f32 %v2321_v5, %v984_v2  ;;  %v2303_v2 = vld [vmem:[%s2762_s12 + $0x20] sm:$0xff]  }
 0x21e   : > { %v986_v11 = vadd.f32 %v2323_v9, %v985_v7  ;;  %v2307_v7 = vld [vmem:[%s2762_s12] sm:$0xff]  }
 0x220   : > { %v987_v13 = vrot.slane %v986_v11, 4 }
 0x221   : > { %v2325_v14 = vpop.eup %2324 }
 0x222   : > { %v988_v6 = vadd.f32 %v987_v13, %v986_v11  ;;  %v2327_v15 = vpop.eup %2326 }
 0x223   : > { %v993_v17 = vadd.f32 %v2327_v15, %v2325_v14  ;;  %v2329_v19 = vpop.eup %2328 }
 0x224   : > { %v989_v16 = vrot.slane %v988_v6, 2  ;;  %v2331_v21 = vpop.eup %2330 }
 0x225   : > { %v994_v20 = vadd.f32 %v2329_v19, %v993_v17  ;;  %v2333_v24 = vpop.eup %2332 }
 0x226   : > { %v990_v10 = vadd.f32 %v989_v16, %v988_v6  ;;  %v2335_v27 = vpop.eup %2334 }
 0x227   : > { %v995_v23 = vadd.f32 %v2331_v21, %v994_v20  ;;  %v2337_v29 = vpop.eup %2336 }
 0x228   : > { %v991_v22 = vrot.slane %v990_v10, 1  ;;  %v2339_v31 = vpop.eup %2338 }
 0x229   : > { %v996_v26 = vadd.f32 %v2333_v24, %v995_v23 }
 0x22a   : > { %v992_v25 = vadd.f32 %v991_v22, %v990_v10 }
 0x22b   : > { %v997_v28 = vadd.f32 %v2335_v27, %v996_v26 }
 0x22c   : > { %2340 = vrcp.f32 %v992_v25 }
 0x22d   : > { %v998_v30 = vadd.f32 %v2337_v29, %v997_v28 }
 0x22f   : > { %v999_v32 = vadd.f32 %v2339_v31, %v998_v30 }
 0x231   : > { %v1000_v33 = vrot.slane %v999_v32, 4 }
 0x233   : > { %v1001_v18 = vadd.f32 %v1000_v33, %v999_v32 }
 0x235   : > { %v1002_v34 = vrot.slane %v1001_v18, 2 }
 0x237   : > { %v1003_v35 = vadd.f32 %v1002_v34, %v1001_v18 }
 0x239   : > { %v2341_v36 = vpop.eup %2340  ;;  %v1004_v37 = vrot.slane %v1003_v35, 1 }
 0x23a   : > { %v2914_v38 = vmul.f32 %v2341_v36, %v2901_v43  ;;  %v2917_v39 = vmul.f32 %v2341_v36, %v2903_v44  ;;  %v2919_v40 = vmul.f32 %v2341_v36, %v2313_v51  ;;  %v2921_v41 = vmul.f32 %v2341_v36, %v2315_v57 }
 0x23b   : > { %v2923_v42 = vmul.f32 %v2341_v36, %v2317_v61  ;;  %v2925_v45 = vmul.f32 %v2341_v36, %v2319_v1  ;;  %v1005_v46 = vadd.f32 %v1004_v37, %v1003_v35  ;;  %v2934_v44 = vmul.f32 %v2341_v36, %v2321_v5  ;;  %v2302_v1 = vld [vmem:[%s2762_s12 + $0x28] sm:$0xff]  }
 0x23c   : > { %v1024_v47 = vpack.c.bf16 %v2917_v39, %v2914_v38  ;;  %v1025_v49 = vpack.c.bf16 %v2921_v41, %v2919_v40  ;;  %v2936_v50 = vmul.f32 %v2341_v36, %v2323_v9  ;;  %2180 = vmatprep.subr.bf16.mxu1 %v2302_v1  ;;  %v2306_v5 = vld [vmem:[%s2762_s12 + $0x8] sm:$0xff]   ;;  %s1535_s12 = sshll.u32 %s2828_s8, 4  ;;  %s2436_s8 = sshll.u32 %s2578_s15, 4  ;;  %s2989_s12 = int_to_ptr.vmem [resolvable:$true] %s1535_s12  ;;  %s2437_s8 = int_to_ptr.vmem [resolvable:$false] %s2436_s8 }
 0x23d   : > { %2342 = vrcp.f32 %v1005_v46  ;;  %v1026_v43 = vpack.c.bf16 %v2925_v45, %v2923_v42  ;;  %2188 = vmatpush3.bf16.msra.mxu1 %v2302_v1  ;;  %s2432_s25 = scalar_lea.vmem %s2989_s12, 1024  ;;  %s2438_s13 = scalar_lea.vmem %s2437_s8, 2048 }
 0x23e   : > { %2130 = vmatprep.mubr.bf16.mxu0 %v1024_v47  ;;  %v1027_v51 = vpack.c.bf16 %v2936_v50, %v2934_v44  ;;  %2181 = vmatprep.subr.bf16.mxu1 %v2303_v2  ;;  %p2433_p8 = scmp.ne.s32.totalorder %s2989_s12, %s2432_s25  ;;  %p2439_p2 = scmp.lt.s32.totalorder %s2989_s12, %s2437_s8 }
 0x23f   : > { %2131 = vmatmul.mubr.bf16.vlgmr.msra.gmra.mxu0 %v1025_v49  ;;  %p2440_p3 = scmp.lt.s32.totalorder %s2438_s13, %s2432_s25 }
 0x240   : > { %2134 = vmatprep.mubr.bf16.mxu0 %v1026_v43  ;;  %2147 = vmatpush3.bf16.msra.mxu0 %v2878_v48  ;;  %p2434_p1 = pnand %p2433_p8, %p2683_p9 }
 0x241   : > { %2148 = vmatprep.subr.bf16.mxu0 %v2301_v0  ;;  %2189 = vmatpush3.bf16.msra.mxu1 %v2303_v2  ;;  %p2441_p5 = por %p2440_p3, %p2439_p2 }
 0x242   : > { %2182 = vmatprep.subr.bf16.mxu1 %v2304_v3  ;;  %p2435_p12 = pneg %p2434_p1 }
 0x244   : > { %2149 = vmatpush3.bf16.msra.mxu0 %v2301_v0  ;;  %p2442_p4 = pnand %p2441_p5, %p2435_p12 }
 0x245   : > { %2150 = vmatprep.subr.bf16.mxu0 %v2302_v1  ;;  %2190 = vmatpush3.bf16.msra.mxu1 %v2304_v3 }
 0x246   : > { %2183 = vmatprep.subr.bf16.mxu1 %v2305_v4 }
 0x247   : > { %2135 = vmatmul.mubr.bf16.gmra.mxu0 %v1027_v51 }
 0x248   : > { %2151 = vmatpush3.bf16.msra.mxu0 %v2302_v1 }
 0x249   : > { %2152 = vmatprep.subr.bf16.mxu0 %v2303_v2  ;;  %2191 = vmatpush3.bf16.msra.mxu1 %v2305_v4 }
 0x24a   : > { %v2343_v52 = vpop.eup %2342  ;;  %2184 = vmatprep.subr.bf16.mxu1 %v2306_v5 }
 0x24b   : > { %v2940_v53 = vmul.f32 %v2343_v52, %v2325_v14  ;;  %v2942_v54 = vmul.f32 %v2343_v52, %v2327_v15  ;;  %v2944_v55 = vmul.f32 %v2343_v52, %v2329_v19  ;;  %v2946_v56 = vmul.f32 %v2343_v52, %v2331_v21 }
 0x24c   : > { %v2948_v57 = vmul.f32 %v2343_v52, %v2333_v24  ;;  %v2950_v48 = vmul.f32 %v2343_v52, %v2335_v27  ;;  %v2958_v61 = vmul.f32 %v2343_v52, %v2337_v29  ;;  %v2960_v62 = vmul.f32 %v2343_v52, %v2339_v31  ;;  %2153 = vmatpush3.bf16.msra.mxu0 %v2303_v2 }
 0x24d   : > { %v1028_v58 = vpack.c.bf16 %v2942_v54, %v2940_v53  ;;  %v1029_v59 = vpack.c.bf16 %v2946_v56, %v2944_v55  ;;  %2154 = vmatprep.subr.bf16.mxu0 %v2304_v3  ;;  %2192 = vmatpush3.bf16.msra.mxu1 %v2306_v5 }
 0x24e   : > { %v1030_v60 = vpack.c.bf16 %v2950_v48, %v2948_v57  ;;  %v1031_v63 = vpack.c.bf16 %v2960_v62, %v2958_v61  ;;  %2185 = vmatprep.subr.bf16.mxu1 %v2307_v7 }
 0x24f   : > { %2138 = vmatprep.mubr.bf16.mxu0 %v1028_v58 }
 0x250   : > { %2139 = vmatmul.mubr.bf16.gmra.mxu0 %v1029_v59 }
 0x251   : > { %2142 = vmatprep.mubr.bf16.mxu0 %v1030_v60  ;;  %2155 = vmatpush3.bf16.msra.mxu0 %v2304_v3 }
 0x252   : > { %2156 = vmatprep.subr.bf16.mxu0 %v2305_v4  ;;  %2193 = vmatpush3.bf16.msra.mxu1 %v2307_v7 }
 0x255   : > { %2157 = vmatpush3.bf16.msra.mxu0 %v2305_v4 }
 0x256   : > { %2158 = vmatprep.subr.bf16.mxu0 %v2306_v5 }
 0x258   : > { %2143 = vmatmul.mubr.bf16.gmra.mxu0 %v1031_v63 }
 0x259   : > { %2159 = vmatpush3.bf16.msra.mxu0 %v2306_v5 }
 0x25a   : > { %2160 = vmatprep.subr.bf16.mxu0 %v2307_v7 }
 0x25d   : > { %2161 = vmatpush3.bf16.msra.mxu0 %v2307_v7 }
 0x2ff   : > { %v2132_v8 = vpop.f32.mrf.mxu0 }
 0x300   : > { %v1139_v12 = vadd.f32 1e-09, %v2132_v8 }
 0x301   : > { %v1130_v9 = vpop.f32.mrf.mxu0 }
 0x302   : > { %v1131_v11 = vadd.f32 1e-09, %v1130_v9 }
 0x303   : > { %v2133_v13 = vpop.f32.mrf.mxu0 }
 0x304   : > { %v1142_v14 = vadd.f32 1e-09, %v2133_v13  ;;  %2344 = vrcp.f32 %v1131_v11 }
 0x305   : > { %v1133_v6 = vpop.f32.mrf.mxu0 }
 0x306   : > { %2346 = vrcp.f32 %v1142_v14  ;;  %v1134_v15 = vadd.f32 1e-09, %v1133_v6 }
 0x307   : > { %2348 = vrcp.f32 %v1139_v12  ;;  %v2136_v16 = vpop.f32.mrf.mxu0 }
 0x308   : > { %2350 = vrcp.f32 %v1134_v15  ;;  %v1155_v10 = vadd.f32 1e-09, %v2136_v16 }
 0x309   : > { %v1146_v17 = vpop.f32.mrf.mxu0 }
 0x30a   : > { %v1147_v19 = vadd.f32 1e-09, %v1146_v17 }
 0x30b   : > { %v2137_v20 = vpop.f32.mrf.mxu0 }
 0x30c   : > { %v1158_v21 = vadd.f32 1e-09, %v2137_v20  ;;  %2352 = vrcp.f32 %v1147_v19 }
 0x30d   : > { %v1149_v22 = vpop.f32.mrf.mxu0 }
 0x30e   : > { %2354 = vrcp.f32 %v1158_v21  ;;  %v1150_v23 = vadd.f32 1e-09, %v1149_v22 }
 0x30f   : > { %2356 = vrcp.f32 %v1155_v10 }
 0x310   : > { %2358 = vrcp.f32 %v1150_v23  ;;  %v2140_v24 = vpop.f32.mrf.mxu0 }
 0x311   : > { %v2345_v25 = vpop.eup %2344  ;;  %v1171_v31 = vadd.f32 1e-09, %v2140_v24 }
 0x312   : > { %v1162_v27 = vpop.f32.mrf.mxu0  ;;  %v1209_v34 = vmul.f32 %v2345_v25, %v2914_v38 }
 0x313   : > { %v2347_v26 = vpop.eup %2346  ;;  %v1163_v29 = vadd.f32 1e-09, %v1162_v27 }
 0x314   : > { %v2349_v28 = vpop.eup %2348  ;;  %v2141_v32 = vpop.f32.mrf.mxu0  ;;  %v1212_v33 = vmul.f32 %v2347_v26, %v2921_v41 }
 0x315   : > { %v2351_v30 = vpop.eup %2350  ;;  %v1174_v18 = vadd.f32 1e-09, %v2141_v32  ;;  %2360 = vrcp.f32 %v1163_v29  ;;  %v1211_v37 = vmul.f32 %v2349_v28, %v2919_v40 }
 0x316   : > { %v1210_v35 = vmul.f32 %v2351_v30, %v2917_v39  ;;  %v1165_v36 = vpop.f32.mrf.mxu0 }
 0x317   : > { %2362 = vrcp.f32 %v1174_v18  ;;  %v1166_v46 = vadd.f32 1e-09, %v1165_v36  ;;  %v1226_v43 = vpack.c.bf16 %v1212_v33, %v1211_v37 }
 0x318   : > { %v1225_v47 = vpack.c.bf16 %v1210_v35, %v1209_v34  ;;  %2364 = vrcp.f32 %v1171_v31  ;;  %v2144_v49 = vpop.f32.mrf.mxu0 }
 0x319   : > { %v2353_v51 = vpop.eup %2352  ;;  %2366 = vrcp.f32 %v1166_v46  ;;  %v1187_v39 = vadd.f32 1e-09, %v2144_v49 }
 0x31a   : > { %2162 = vmatprep.mubr.bf16.mxu0 %v1225_v47  ;;  %v1178_v41 = vpop.f32.mrf.mxu0  ;;  %v1213_v0 = vmul.f32 %v2353_v51, %v2923_v42 }
 0x31b   : > { %v2355_v52 = vpop.eup %2354  ;;  %2163 = vmatmul.mubr.bf16.vlgmr.msra.gmra.mxu0 %v1226_v43  ;;  %v1179_v38 = vadd.f32 1e-09, %v1178_v41 }
 0x31c   : > { %v2357_v58 = vpop.eup %2356  ;;  %v2145_v60 = vpop.f32.mrf.mxu0  ;;  %v1216_v63 = vmul.f32 %v2355_v52, %v2936_v50 }
 0x31d   : > { %v2359_v59 = vpop.eup %2358  ;;  %v1190_v40 = vadd.f32 1e-09, %v2145_v60  ;;  %2368 = vrcp.f32 %v1179_v38  ;;  %v1215_v3 = vmul.f32 %v2357_v58, %v2934_v44 }
 0x31e   : > { %v1214_v1 = vmul.f32 %v2359_v59, %v2925_v45  ;;  %v1181_v2 = vpop.f32.mrf.mxu0 }
 0x31f   : > { %2370 = vrcp.f32 %v1190_v40  ;;  %v1182_v4 = vadd.f32 1e-09, %v1181_v2  ;;  %v1228_v7 = vpack.c.bf16 %v1216_v63, %v1215_v3 }
 0x320   : > { %v1227_v5 = vpack.c.bf16 %v1214_v1, %v1213_v0  ;;  %2372 = vrcp.f32 %v1187_v39 }
 0x321   : > { %2374 = vrcp.f32 %v1182_v4 }
 0x322   : > { %2166 = vmatprep.mubr.bf16.mxu1 %v1227_v5  ;;  %v2361_v8 = vpop.eup %2360 }
 0x323   : > { %2167 = vmatmul.mubr.bf16.vlgmr.msra.gmra.mxu1 %v1228_v7  ;;  %v1217_v45 = vmul.f32 %v2361_v8, %v2940_v53 }
 0x324   : > { %v2363_v9 = vpop.eup %2362 }
 0x325   : > { %v2365_v50 = vpop.eup %2364  ;;  %v1220_v42 = vmul.f32 %v2363_v9, %v2946_v56 }
 0x326   : > { %v2367_v11 = vpop.eup %2366  ;;  %v1219_v44 = vmul.f32 %v2365_v50, %v2944_v55 }
 0x327   : > { %v1218_v12 = vmul.f32 %v2367_v11, %v2942_v54 }
 0x328   : > { %v1230_v14 = vpack.c.bf16 %v1220_v42, %v1219_v44 }
 0x329   : > { %v1229_v13 = vpack.c.bf16 %v1218_v12, %v1217_v45 }
 0x32a   : > { %v2369_v6 = vpop.eup %2368 }
 0x32b   : > { %2170 = vmatprep.mubr.bf16.mxu1 %v1229_v13  ;;  %v1221_v53 = vmul.f32 %v2369_v6, %v2948_v57 }
 0x32c   : > { %v2371_v15 = vpop.eup %2370  ;;  %2171 = vmatmul.mubr.bf16.gmra.mxu1 %v1230_v14 }
 0x32d   : > { %v2373_v16 = vpop.eup %2372  ;;  %v1224_v56 = vmul.f32 %v2371_v15, %v2960_v62 }
 0x32e   : > { %v2375_v17 = vpop.eup %2374  ;;  %v1223_v55 = vmul.f32 %v2373_v16, %v2958_v61 }
 0x32f   : > { %v1222_v54 = vmul.f32 %v2375_v17, %v2950_v48 }
 0x330   : > { %v1232_v10 = vpack.c.bf16 %v1224_v56, %v1223_v55 }
 0x331   : > { %v1231_v19 = vpack.c.bf16 %v1222_v54, %v1221_v53 }
 0x333   : > { %2174 = vmatprep.mubr.bf16.mxu1 %v1231_v19 }
 0x334   : > { %2175 = vmatmul.mubr.bf16.gmra.mxu1 %v1232_v10 }
 0x335   : > { %2445 = shalt.err (!%p2442_p4)
}
 0x336   : > { %s2446_s26 = scalar_lea.hbm %s2996_s17, 1024  ;;  %s2450_s27 = scalar_lea.hbm %s3132_s6, 3072 }
 0x337   : > { %p2447_p6 = scmp.ne.s32.totalorder %s2996_s17, %s2446_s26  ;;  %p2451_p10 = scmp.lt.s32.totalorder %s2996_s17, %s3132_s6 }
 0x338   : > { %p2452_p13 = scmp.lt.s32.totalorder %s2450_s27, %s2446_s26 }
 0x339   : > { %p2448_p0 = pnand %p2447_p6, %p2683_p9 }
 0x33a   : > { %p2453_p8 = por %p2452_p13, %p2451_p10 }
 0x33b   : > { %p2449_p7 = pneg %p2448_p0 }
 0x33d   : > { %p2454_p1 = pnand %p2453_p8, %p2449_p7 }
 0x33f   : > { %2457 = shalt.err (!%p2454_p1)
}
 0x340   : > { %s2579_s24 = smov 64   ;;  %s2580_s25 = smov 4  }
 0x341   : > { %2199 = dma.vmem_to_hbm [thread:$0]  (%p2683_p9), %s2989_s12, 1024, %s2996_s17, %s1509_s19, %s2579_s24, %s2579_s24, %s2580_s25  }
 0x342   : > { %s3025_s15 = scalar_lea.vmem [#allocation8], %s2750_s21  ;;  %s1513_s21 = sand.u32 1, %s2659_s11  }
 0x343   : > { %s1554_s29 = sshll.u32 %s3025_s15, 4  ;;  %s1874_s12 = sshll.u32 %s2564_s30, 5  ;;  %s3037_s29 = int_to_ptr.vmem [resolvable:$true] %s1554_s29 }
 0x344   : > { %s1571_s17 = sshll.u32 %s2850_s3, 4  ;;  %s3045_s13 = scalar_lea.hbm %s3133_s7, %s1911_s16  ;;  %s3052_s17 = int_to_ptr.vmem [resolvable:$true] %s1571_s17 }
 0x345   : > { %s3157_s11 = sld [smem:[#allocation21_spill]]  ;;  %s3055_s3 = scalar_lea.sflag [#allocation9], %s1513_s21 }
 0x346   : > { %s2458_s27 = scalar_lea.vmem %s3037_s29, 1024  ;;  %s2581_s30 = smov [#allocation8]  }
 0x347   : > { %p2459_p12 = scmp.ne.s32.totalorder %s3037_s29, %s2458_s27  ;;  %s2462_s22 = sshll.u32 %s2581_s30, 4  ;;  %s2463_s22 = int_to_ptr.vmem [resolvable:$false] %s2462_s22 }
 0x348   : > { %s2464_s16 = scalar_lea.vmem %s2463_s22, 2048  ;;  %p2465_p5 = scmp.lt.s32.totalorder %s3037_s29, %s2463_s22 }
 0x349   : > { %p2460_p2 = pnand %p2459_p12, %p2683_p9  ;;  %p2466_p4 = scmp.lt.s32.totalorder %s2464_s16, %s2458_s27 }
 0x34b   : > { %s3050_s23 = scalar_lea.hbm %s3157_s11, %s1874_s12  ;;  %p2461_p3 = pneg %p2460_p2 }
 0x34c   : > { %p2467_p6 = por %p2466_p4, %p2465_p5 }
 0x34e   : > { %p2468_p0 = pnand %p2467_p6, %p2461_p3 }
 0x3db   : > { %v2164_v57 = vpop.f32.mrf.mxu0 }
 0x3dd   : > { %v1331_v48 = vpop.f32.mrf.mxu0 }
 0x3df   : > { %v2165_v61 = vpop.f32.mrf.mxu0 }
 0x3e0   : > { %v1961_v62 = vpack.c.bf16 %v2165_v61, %v2164_v57 }
 0x3e1   : > { %v1334_v20 = vpop.f32.mrf.mxu0 }
 0x3e2   : > { %2000 = vst [vmem:[%s3025_s15 + $0x8] sm:$0xff] %v1961_v62   ;;  %v1956_v21 = vpack.c.bf16 %v1334_v20, %v1331_v48 }
 0x3e3   : > { %v2168_v22 = vpop.f32.mrf.mxu1 }
 0x3e4   : > { %1957 = vst [vmem:[%s3025_s15] sm:$0xff] %v1956_v21  }
 0x3e5   : > { %v1347_v23 = vpop.f32.mrf.mxu1 }
 0x3e7   : > { %v2169_v24 = vpop.f32.mrf.mxu1 }
 0x3e8   : > { %v1971_v25 = vpack.c.bf16 %v2169_v24, %v2168_v22 }
 0x3e9   : > { %v1350_v26 = vpop.f32.mrf.mxu1 }
 0x3ea   : > { %2002 = vst [vmem:[%s3025_s15 + $0x18] sm:$0xff] %v1971_v25   ;;  %v1966_v27 = vpack.c.bf16 %v1350_v26, %v1347_v23 }
 0x3ec   : > { %2001 = vst [vmem:[%s3025_s15 + $0x10] sm:$0xff] %v1966_v27   ;;  %v2172_v28 = vpop.f32.mrf.mxu1 }
 0x3ee   : > { %v1363_v29 = vpop.f32.mrf.mxu1 }
 0x3f0   : > { %v2173_v30 = vpop.f32.mrf.mxu1 }
 0x3f1   : > { %v1981_v31 = vpack.c.bf16 %v2173_v30, %v2172_v28 }
 0x3f2   : > { %v1366_v32 = vpop.f32.mrf.mxu1 }
 0x3f3   : > { %2004 = vst [vmem:[%s3025_s15 + $0x28] sm:$0xff] %v1981_v31   ;;  %v1976_v33 = vpack.c.bf16 %v1366_v32, %v1363_v29 }
 0x3f4   : > { %v2176_v18 = vpop.f32.mrf.mxu1 }
 0x3f5   : > { %2003 = vst [vmem:[%s3025_s15 + $0x20] sm:$0xff] %v1976_v33  }
 0x3f6   : > { %v1379_v34 = vpop.f32.mrf.mxu1 }
 0x3f8   : > { %v2177_v35 = vpop.f32.mrf.mxu1 }
 0x3f9   : > { %v1991_v36 = vpack.c.bf16 %v2177_v35, %v2176_v18 }
 0x3fa   : > { %v1382_v37 = vpop.f32.mrf.mxu1 }
 0x3fb   : > { %2006 = vst [vmem:[%s3025_s15 + $0x38] sm:$0xff] %v1991_v36   ;;  %v1986_v46 = vpack.c.bf16 %v1382_v37, %v1379_v34 }
 0x3fd   : > { %2005 = vst [vmem:[%s3025_s15 + $0x30] sm:$0xff] %v1986_v46  }
 0x3fe   : > { %2471 = shalt.err (!%p2468_p0)
}
 0x3ff   : > { %s2472_s14 = scalar_lea.hbm %s3045_s13, 1024  ;;  %s2476_s12 = scalar_lea.hbm %s3133_s7, 3072 }
 0x400   : > { %p2473_p7 = scmp.ne.s32.totalorder %s3045_s13, %s2472_s14  ;;  %p2477_p8 = scmp.lt.s32.totalorder %s3045_s13, %s3133_s7 }
 0x401   : > { %p2478_p1 = scmp.lt.s32.totalorder %s2476_s12, %s2472_s14 }
 0x402   : > { %p2474_p10 = pnand %p2473_p7, %p2683_p9 }
 0x403   : > { %p2479_p12 = por %p2478_p1, %p2477_p8 }
 0x404   : > { %p2475_p13 = pneg %p2474_p10 }
 0x406   : > { %p2480_p2 = pnand %p2479_p12, %p2475_p13 }
 0x408   : > { %2483 = shalt.err (!%p2480_p2)
}
 0x409   : > { %2200 = dma.vmem_to_hbm [thread:$0]  (%p2683_p9), %s3037_s29, 1024, %s3045_s13, %s3055_s3, %s2579_s24, %s2579_s24, %s2580_s25  }
 0x40a   : > { %s2484_s26 = scalar_lea.vmem %s3052_s17, 32  ;;  %s2582_s20 = smov [#allocation10]  }
 0x40b   : > { %p2485_p3 = scmp.ne.s32.totalorder %s3052_s17, %s2484_s26  ;;  %s2488_s27 = sshll.u32 %s2582_s20, 4  ;;  %s2489_s27 = int_to_ptr.vmem [resolvable:$false] %s2488_s27 }
 0x40c   : > { %s2490_s30 = scalar_lea.vmem %s2489_s27, 64  ;;  %p2491_p6 = scmp.lt.s32.totalorder %s3052_s17, %s2489_s27 }
 0x40d   : > { %p2486_p5 = pnand %p2485_p3, %p2683_p9  ;;  %p2492_p0 = scmp.lt.s32.totalorder %s2490_s30, %s2484_s26 }
 0x40f   : > { %p2487_p4 = pneg %p2486_p5  ;;  %p2493_p7 = por %p2492_p0, %p2491_p6 }
 0x411   : > { %p2494_p10 = pnand %p2493_p7, %p2487_p4 }
 0x413   : > { %2497 = shalt.err (!%p2494_p10)
}
 0x414   : > { %s2498_s22 = scalar_lea.hbm %s3050_s23, 32  ;;  %s2502_s29 = scalar_lea.hbm %s3157_s11, 96 }
 0x415   : > { %p2499_p13 = scmp.ne.s32.totalorder %s3050_s23, %s2498_s22  ;;  %p2503_p12 = scmp.lt.s32.totalorder %s3050_s23, %s3157_s11 }
 0x416   : > { %p2504_p2 = scmp.lt.s32.totalorder %s2502_s29, %s2498_s22 }
 0x417   : > { %p2500_p8 = pnand %p2499_p13, %p2683_p9 }
 0x418   : > { %p2505_p3 = por %p2504_p2, %p2503_p12 }
 0x419   : > { %p2501_p1 = pneg %p2500_p8 }
 0x41b   : > { %p2506_p5 = pnand %p2505_p3, %p2501_p1 }
 0x41d   : > { %2509 = shalt.err (!%p2506_p5)
}
 0x41e   : > { %2201 = dma.vmem_to_hbm [thread:$0]  (%p2683_p9), %s3052_s17, 32, %s3050_s23, %s3055_s3  }
 0x41f PF: > { %s3158_s14 = sld [smem:[#allocation15_spill]]  ;;  %p2223_p4 = scmp.ge.s32.totalorder %s2572_s10, 2 }
 0x421   : > { %p2213_p6 = pnand %p2223_p4, %p2692_p11 }
 0x423   : > { %p2214_p0 = pneg %p2213_p6 }
 0x425   : > { %s1583_s21 = sand.u32 1, %s3158_s14  }
 0x426   : > { %s1584_s12 = scalar_lea.sflag [#allocation4], %s1583_s21 }
 0x427   : > { %2543 = dma.done.wait (%p2214_p0), %s1584_s12, 1024  }
 0x428   : > { %2545 = vsyncadd (%p2214_p0), %s1584_s12, 4294966272  ;;  %s3160_s19 = sadd.s32 4294967294, %s2572_s10  }
 0x429   : > { %s1592_s8 = sand.u32 1, %s3160_s19  }
 0x42a   : > { %s1593_s18 = scalar_lea.sflag [#allocation9], %s1592_s8 }
 0x42b   : > { %2547 = dma.done.wait (%p2214_p0), %s1593_s18, 1056  }
 0x42c   : > { %2549 = vsyncadd (%p2214_p0), %s1593_s18, 4294966240  ;;  %s31_s10 = sadd.s32 1, %s2572_s10   ;;  %s3161_s17 = sld [smem:[#allocation16_spill]] }
 0x42d   : > { %p28_p9 = scmp.ge.s32.totalorder %s31_s10, 5   ;;  %s3162_s29 = sld [smem:[#allocation18_spill]] }
 0x42e   : > { %s3163_s23 = sld [smem:[#allocation17_spill]]  ;;  %s3164_s27 = smov %s2556_s28 }
 0x42f   : > { %s3166_s30 = smov %s2568_s9 }
 0x430   :  { %30 = sbr.rel (!%p28_p9) target bundleno = 13 (0xd), region = 143 }
 0x432   : > { %s3165_s28 = smov %s3161_s17 }
 0x434   : > { %s3167_s9 = smov %s3163_s23 }
 0x435   :  { %1607 = vsyncpa [#allocation3], 1 }
 0x436   :  { %1609 = vsyncpa [#allocation3 + $0x1], 1 }
 0x437   :  { %1610 = vsyncpa [#allocation6], 1 }
 0x438   :  { %1612 = vsyncpa [#allocation6 + $0x1], 1 }
 0x439   :  { %1613 = vsyncpa [#allocation4], 1 }
 0x43a   :  { %1615 = vsyncpa [#allocation4 + $0x1], 1 }
 0x43b   :  { %1616 = vsyncpa [#allocation9], 1 }
 0x43c   :  { %1618 = vsyncpa [#allocation9 + $0x1], 1 }

</bundles_post_ra>
